<compile_context>
chip_gen: v5e
topology: v5e:2x2
jax: 0.10.0
libtpu: 0.0.40
codegen_flags: <defaults>
</compile_context>

<pallas_src>
import jax
import jax.numpy as jnp
from jax.experimental import pallas as pl
from jax.experimental.pallas import tpu as pltpu

# --- augmentation constants (from the PyTorch module __init__) ---
_MIN_GAMMA, _MAX_GAMMA = 0.8, 1.2
_MIN_BRGHT, _MAX_BRGHT = 0.5, 2.0
_MIN_SHIFT, _MAX_SHIFT = 0.8, 1.2
_INTV_GAMMA = _MAX_GAMMA - _MIN_GAMMA
_INTV_BRGHT = _MAX_BRGHT - _MIN_BRGHT
_INTV_SHIFT = _MAX_SHIFT - _MIN_SHIFT


def _make_kernel(num_images):
    def kernel(gamma_ref, logscale_ref, *refs):
        # gamma_ref:    (1, 3, 1) f32   per-batch gamma (same value for all channels)
        # logscale_ref: (1, 3, 1) f32   per-(batch, rgb-channel) log(brightness*shift)
        # refs[:num_images]  -> input tiles  (1, 3, TILE_HW)
        # refs[num_images:]  -> output tiles (1, 3, TILE_HW)
        g = gamma_ref[...]          # f32, broadcast over lanes
        ls = logscale_ref[...]      # f32, broadcast over lanes
        for i in range(num_images):
            x = refs[i][...].astype(jnp.float32)
            # x ** g * s == exp(g*log(x) + log(s));  x == 0 -> exp(-inf) == 0,
            # matching torch.pow for non-negative inputs.
            y = jnp.exp(g * jnp.log(x) + ls)
            o_ref = refs[num_images + i]
            o_ref[...] = jnp.clip(y, 0.0, 1.0).astype(o_ref.dtype)
    return kernel


def _pick_tiling(hw, c, itemsize, num_images):
    """Choose TILE_HW (multiple of 128) and padded hw so that the
    double-buffered in+out image tiles stay within ~12 MiB total."""
    budget = 12 * 1024 * 1024                       # total image-tile VMEM budget
    per_buf = max(128 * c * itemsize, budget // (4 * num_images))  # in+out, 2x buffered
    max_tile = max(128, (per_buf // (c * itemsize)) // 128 * 128)
    hw128 = pl.cdiv(hw, 128) * 128
    n_tiles = pl.cdiv(hw128, max_tile)
    tile = pl.cdiv(pl.cdiv(hw128, n_tiles), 128) * 128  # even split -> minimal padding
    hw_pad = n_tiles * tile
    return tile, n_tiles, hw_pad


def photometric_augmentation(args, key):
    """JAX/Pallas equivalent of PhotometricAugmentation.forward.

    args: tuple/list of NCHW float arrays, each with 3 channels, same shape.
    key:  jax PRNG key (replaces the torch.rand calls).
    Returns a tuple of len(args) NCHW arrays.
    """
    num_images = len(args)
    b, c, h, w = args[0].shape
    assert c == 3, "PhotometricAugmentation assumes 3-channel (RGB) inputs"
    dtype = args[0].dtype
    hw = h * w
    itemsize = jnp.dtype(dtype).itemsize

    # --- random parameters (glue, plain JAX; matches the torch.rand draws) ---
    kg, kb, ks = jax.random.split(key, 3)
    rand_gamma = jax.random.uniform(kg, (b,), dtype=jnp.float32) * _INTV_GAMMA + _MIN_GAMMA
    rand_brght = jax.random.uniform(kb, (b,), dtype=jnp.float32) * _INTV_BRGHT + _MIN_BRGHT
    rand_shift = jax.random.uniform(ks, (b, 3), dtype=jnp.float32) * _INTV_SHIFT + _MIN_SHIFT

    # Shift repeats every 3 channels of the (conceptually) concatenated tensor,
    # so every image sees the same (B, 3) scale.  Fold brightness in and take log.
    gamma_in = jnp.broadcast_to(rand_gamma[:, None], (b, 3)).reshape(b, 3, 1)
    logscale_in = jnp.log(rand_brght[:, None] * rand_shift).reshape(b, 3, 1)

    tile, n_tiles, hw_pad = _pick_tiling(hw, c, itemsize, num_images)

    xs = []
    for a in args:
        xf = a.reshape(b, c, hw)
        if hw_pad != hw:
            # Pad with 1.0 (safe under log); padded lanes are sliced off below.
            xf = jnp.pad(xf, ((0, 0), (0, 0), (0, hw_pad - hw)), constant_values=1.0)
        xs.append(xf)

    img_spec = pl.BlockSpec((1, c, tile), lambda i, j: (i, 0, j))
    scal_spec = pl.BlockSpec((1, 3, 1), lambda i, j: (i, 0, 0))

    total_elems = b * c * hw_pad * num_images
    outs = pl.pallas_call(
        _make_kernel(num_images),
        out_shape=tuple(
            jax.ShapeDtypeStruct((b, c, hw_pad), dtype) for _ in range(num_images)
        ),
        grid_spec=pltpu.PrefetchScalarGridSpec(
            num_scalar_prefetch=0,
            grid=(b, n_tiles),
            in_specs=[scal_spec, scal_spec] + [img_spec] * num_images,
            out_specs=[img_spec] * num_images,
        ),
        compiler_params=pltpu.CompilerParams(
            dimension_semantics=("parallel", "parallel")),
        cost_estimate=pl.CostEstimate(
            flops=4 * total_elems,
            transcendentals=2 * total_elems,
            bytes_accessed=2 * total_elems * itemsize),
    )(gamma_in, logscale_in, *xs)

    results = []
    for o in outs:
        if hw_pad != hw:
            o = o[:, :, :hw]
        results.append(o.reshape(b, c, h, w))
    return tuple(results)


def _reference(args, key):
    """Pure-JAX reference mirroring the PyTorch semantics (same RNG draws)."""
    num_images = len(args)
    x = jnp.concatenate(args, axis=1)
    dtype = x.dtype
    b = x.shape[0]
    kg, kb, ks = jax.random.split(key, 3)
    rand_gamma = jax.random.uniform(kg, (b,), dtype=jnp.float32) * _INTV_GAMMA + _MIN_GAMMA
    rand_brght = jax.random.uniform(kb, (b,), dtype=jnp.float32) * _INTV_BRGHT + _MIN_BRGHT
    rand_shift = jax.random.uniform(ks, (b, 3), dtype=jnp.float32) * _INTV_SHIFT + _MIN_SHIFT
    y = x.astype(jnp.float32) ** rand_gamma[:, None, None, None]
    y = y * rand_brght[:, None, None, None]
    shift_full = jnp.tile(rand_shift, (1, num_images))[:, :, None, None]
    y = jnp.clip(y * shift_full, 0.0, 1.0).astype(dtype)
    return tuple(jnp.split(y, num_images, axis=1))


if __name__ == "__main__":
    key = jax.random.PRNGKey(0)
    k_rng, k1, k2 = jax.random.split(key, 3)

    # Two NCHW images: batch=2, channels=3, spatial=16x16 (values in [0, 1))
    img1 = jax.random.uniform(k1, (2, 3, 16, 16), dtype=jnp.float32)
    img2 = jax.random.uniform(k2, (2, 3, 16, 16), dtype=jnp.float32)

    outs = photometric_augmentation((img1, img2), k_rng)
    outs = jax.block_until_ready(outs)

    refs = _reference((img1, img2), k_rng)
    for o, r in zip(outs, refs):
        assert o.shape == r.shape and o.dtype == r.dtype
        assert jnp.allclose(o, r, atol=1e-5, rtol=1e-5), "mismatch vs reference"

    print("KERNEL_OK")
</pallas_src>

<mosaic_0001>
module attributes {stable_mosaic.version = 11 : i64} {
  func.func @kernel(%arg0: i32, %arg1: i32, %arg2: memref<1x3x1xf32, #tpu.memory_space<vmem>>, %arg3: memref<1x3x1xf32, #tpu.memory_space<vmem>>, %arg4: memref<1x3x256xf32, #tpu.memory_space<vmem>>, %arg5: memref<1x3x256xf32, #tpu.memory_space<vmem>>, %arg6: memref<1x3x256xf32, #tpu.memory_space<vmem>>, %arg7: memref<1x3x256xf32, #tpu.memory_space<vmem>>) attributes {dimension_semantics = [#tpu.dimension_semantics<parallel>, #tpu.dimension_semantics<parallel>], iteration_bounds = array<i64: 2, 1>, scalar_prefetch = 0 : i64, scratch_operands = 0 : i64, tpu.core_type = #tpu.core_type<tc>, window_params = [{transform_indices = @transform_0, window_bounds = array<i64: 1, 3, 1>}, {transform_indices = @transform_1, window_bounds = array<i64: 1, 3, 1>}, {transform_indices = @transform_2, window_bounds = array<i64: 1, 3, 256>}, {transform_indices = @transform_3, window_bounds = array<i64: 1, 3, 256>}, {transform_indices = @transform_4, window_bounds = array<i64: 1, 3, 256>}, {transform_indices = @transform_5, window_bounds = array<i64: 1, 3, 256>}]} {
    %c0 = arith.constant 0 : index
    %c0_0 = arith.constant 0 : index
    %c0_1 = arith.constant 0 : index
    %0 = vector.load %arg2[%c0, %c0_0, %c0_1] : memref<1x3x1xf32, #tpu.memory_space<vmem>>, vector<1x3x1xf32>
    %c0_2 = arith.constant 0 : index
    %c0_3 = arith.constant 0 : index
    %c0_4 = arith.constant 0 : index
    %1 = vector.load %arg3[%c0_2, %c0_3, %c0_4] : memref<1x3x1xf32, #tpu.memory_space<vmem>>, vector<1x3x1xf32>
    %c0_5 = arith.constant 0 : index
    %c0_6 = arith.constant 0 : index
    %c0_7 = arith.constant 0 : index
    %2 = vector.load %arg4[%c0_5, %c0_6, %c0_7] : memref<1x3x256xf32, #tpu.memory_space<vmem>>, vector<1x3x256xf32>
    %3 = math.log %2 : vector<1x3x256xf32>
    %4 = vector.broadcast %0 : vector<1x3x1xf32> to vector<1x3x256xf32>
    %5 = arith.mulf %4, %3 : vector<1x3x256xf32>
    %6 = vector.broadcast %1 : vector<1x3x1xf32> to vector<1x3x256xf32>
    %7 = arith.addf %5, %6 : vector<1x3x256xf32>
    %8 = math.exp %7 : vector<1x3x256xf32>
    %cst = arith.constant 0.000000e+00 : f32
    %cst_8 = arith.constant 1.000000e+00 : f32
    %9 = vector.broadcast %cst : f32 to vector<1x3x256xf32>
    %10 = arith.maximumf %9, %8 : vector<1x3x256xf32>
    %11 = vector.broadcast %cst_8 : f32 to vector<1x3x256xf32>
    %12 = arith.minimumf %11, %10 : vector<1x3x256xf32>
    %c0_9 = arith.constant 0 : index
    %c0_10 = arith.constant 0 : index
    %c0_11 = arith.constant 0 : index
    %13 = vector.load %arg6[%c0_9, %c0_10, %c0_11] : memref<1x3x256xf32, #tpu.memory_space<vmem>>, vector<1x3x256xf32>
    tpu.vector_store %arg6[%c0_9, %c0_10, %c0_11], %12 {strides = array<i32>} : memref<1x3x256xf32, #tpu.memory_space<vmem>>, vector<1x3x256xf32>,
    %c0_12 = arith.constant 0 : index
    %c0_13 = arith.constant 0 : index
    %c0_14 = arith.constant 0 : index
    %14 = vector.load %arg5[%c0_12, %c0_13, %c0_14] : memref<1x3x256xf32, #tpu.memory_space<vmem>>, vector<1x3x256xf32>
    %15 = math.log %14 : vector<1x3x256xf32>
    %16 = vector.broadcast %0 : vector<1x3x1xf32> to vector<1x3x256xf32>
    %17 = arith.mulf %16, %15 : vector<1x3x256xf32>
    %18 = vector.broadcast %1 : vector<1x3x1xf32> to vector<1x3x256xf32>
    %19 = arith.addf %17, %18 : vector<1x3x256xf32>
    %20 = math.exp %19 : vector<1x3x256xf32>
    %cst_15 = arith.constant 0.000000e+00 : f32
    %cst_16 = arith.constant 1.000000e+00 : f32
    %21 = vector.broadcast %cst_15 : f32 to vector<1x3x256xf32>
    %22 = arith.maximumf %21, %20 : vector<1x3x256xf32>
    %23 = vector.broadcast %cst_16 : f32 to vector<1x3x256xf32>
    %24 = arith.minimumf %23, %22 : vector<1x3x256xf32>
    %c0_17 = arith.constant 0 : index
    %c0_18 = arith.constant 0 : index
    %c0_19 = arith.constant 0 : index
    %25 = vector.load %arg7[%c0_17, %c0_18, %c0_19] : memref<1x3x256xf32, #tpu.memory_space<vmem>>, vector<1x3x256xf32>
    tpu.vector_store %arg7[%c0_17, %c0_18, %c0_19], %24 {strides = array<i32>} : memref<1x3x256xf32, #tpu.memory_space<vmem>>, vector<1x3x256xf32>,
    return
  }
  func.func @transform_0(%arg0: i32, %arg1: i32) -> (i32, i32, i32) {
    %c0_i32 = arith.constant 0 : i32
    %c0_i32_0 = arith.constant 0 : i32
    %c0_i32_1 = arith.constant 0 : i32
    return %arg0, %c0_i32, %c0_i32_0 : i32, i32, i32
  }
  func.func @transform_1(%arg0: i32, %arg1: i32) -> (i32, i32, i32) {
    %c0_i32 = arith.constant 0 : i32
    %c0_i32_0 = arith.constant 0 : i32
    %c0_i32_1 = arith.constant 0 : i32
    return %arg0, %c0_i32, %c0_i32_0 : i32, i32, i32
  }
  func.func @transform_2(%arg0: i32, %arg1: i32) -> (i32, i32, i32) {
    %c0_i32 = arith.constant 0 : i32
    %c0_i32_0 = arith.constant 0 : i32
    return %arg0, %c0_i32, %arg1 : i32, i32, i32
  }
  func.func @transform_3(%arg0: i32, %arg1: i32) -> (i32, i32, i32) {
    %c0_i32 = arith.constant 0 : i32
    %c0_i32_0 = arith.constant 0 : i32
    return %arg0, %c0_i32, %arg1 : i32, i32, i32
  }
  func.func @transform_4(%arg0: i32, %arg1: i32) -> (i32, i32, i32) {
    %c0_i32 = arith.constant 0 : i32
    %c0_i32_0 = arith.constant 0 : i32
    return %arg0, %c0_i32, %arg1 : i32, i32, i32
  }
  func.func @transform_5(%arg0: i32, %arg1: i32) -> (i32, i32, i32) {
    %c0_i32 = arith.constant 0 : i32
    %c0_i32_0 = arith.constant 0 : i32
    return %arg0, %c0_i32, %arg1 : i32, i32, i32
  }
}

</mosaic_0001>

<bundles_post_ra>
// kernel: tpu_custom_call.1
= control target key start
LH: loop header
LB: loop body
LE: loop exit
PB: predicated region body
PF: predicated region fallthrough
CT: control target
= control target key end

     0   :  { %s718_s18 = smov 0   ;;  %s720_s19 = smov 0   ;;  %s769_s0 = inlined_call_operand.vmem [shape: f32[2,3,1], index: 0, kind: input, shape index: {}]   ;;  %s770_s1 = inlined_call_operand.vmem [shape: f32[2,3,1], index: 1, kind: input, shape index: {}]   ;;  %s771_s2 = inlined_call_operand.vmem [shape: f32[2,3,256], index: 2, kind: input, shape index: {}]   ;;  %s772_s3 = inlined_call_operand.vmem [shape: f32[2,3,256], index: 3, kind: input, shape index: {}]   ;;  %s773_s4 = inlined_call_operand.vmem [shape: f32[2,3,256], index: 4, kind: output, shape index: {0}]   ;;  %s774_s5 = inlined_call_operand.vmem [shape: f32[2,3,256], index: 5, kind: output, shape index: {1}]  }
   0x1   :  { %s722_s20 = smov 0  }
   0x2 LB: > { %s28_s21 = sadd.s32 1, %s681_s19  ;;  %p608_p0 = scmp.ge.s32.totalorder %s685_s20, 1  ;;  %s685_s20 = sphi %s722_s20, %s16_s20   ;;  %s681_s19 = sphi %s720_s19, %s776_s19   ;;  %s677_s18 = sphi %s718_s18, %s775_s18  }
   0x3   : > { %p30_p1 = scmp.ge.s32.totalorder %s28_s21, 2  ;;  %p248_p2 = scmp.lt.s32.totalorder %s685_s20, 3 }
   0x5   : > { %s778_s21 = smov (%p30_p1, %s28_s21), 0  ;;  %p249_p3 = pnand %p608_p0, %p248_p2 }
   0x6   : > { %p310_p4 = scmp.lt.s32.totalorder (!%p249_p3), %s677_s18, 1 }
   0x7   : > { %252 = sbr.rel (%p249_p3) target bundleno = 161 (0xa1), region = 36 }
   0xc   : > { %v687_v0 = vmov 0   ;;  %s780_s18 = smov (!%p310_p4, %s677_s18), 1  ;;  %vm394_vm0 = vcmask 1043456  }
   0xd   : > { %650 = vset.pattern.permute.xlu0 %v687_v0  ;;  %s609_s22 = sshll.u32 %s780_s18, 2  ;;  %s736_s23 = sshll.u32 %s780_s18, 3 }
   0xe   : > { %s313_s26 = scalar_lea.vmem %s769_s0, %s609_s22  ;;  %s326_s29 = scalar_lea.vmem %s771_s2, %s736_s23 }
   0xf   : > { %v358_v1 = vld [vmem:[%s313_s26] sm:$0x7]  ;;  %s317_s7 = scalar_lea.vmem %s770_s1, %s609_s22  ;;  %s336_s10 = scalar_lea.vmem %s772_s3, %s736_s23 }
  0x10   : > { %v360_v2 = vld [vmem:[%s326_s29] sm:$0x77]  ;;  %365 = vperm.xlu0 %650, %v358_v1   ;;  %s346_s13 = scalar_lea.vmem %s773_s4, %s736_s23  ;;  %s356_s16 = scalar_lea.vmem %s774_s5, %s736_s23 }
  0x11   : > { %651 = vlog2.f32 %v360_v2  ;;  %v359_v3 = vld [vmem:[%s317_s7] sm:$0x7] }
  0x12   : > { %v398_v6 = vld [vmem:[%s336_s10] sm:$0x77] }
  0x13   : > { %653 = vlog2.f32 %v398_v6 }
  0x17   : > { %v652_v4 = vpop.eup %651 }
  0x18   : > { %v362_v5 = vmul.f32 0.6931472, %v652_v4  ;;  %378 = vperm.xlu0 %650, %v359_v3  }
  0x19   : > { %v654_v7 = vpop.eup %653 }
  0x1a   : > { %369 = vst [vmem:[#allocation1] ss:$2 sm:$0xff] %v362_v5  ;;  %v400_v8 = vmul.f32 0.6931472, %v654_v7 }
  0x21   : > { %v370_v9 = vld.sshfl [vmem:[#allocation1] sm:$0xff pattern:$0x75316420]  ;;  %v371_v10 = vld.sshfl [vmem:[#allocation1 + $0x8] sm:$0xff pattern:$0x75316420] }
  0x22   : > { %402 = vst [vmem:[#allocation1] ss:$2 sm:$0xff] %v400_v8 }
  0x29   : > { %v403_v12 = vld.sshfl [vmem:[#allocation1] sm:$0xff pattern:$0x75316420]  ;;  %v404_v13 = vld.sshfl [vmem:[#allocation1 + $0x8] sm:$0xff pattern:$0x75316420] }
  0x82   : > { %v366_v11 = vpop.permute.xlu0 %365 }
  0x83   : > { %v374_v14 = vmul.f32 %v370_v9, %v366_v11  ;;  %v375_v15 = vmul.f32 %v371_v10, %v366_v11  ;;  %v407_v16 = vmul.f32 %v403_v12, %v366_v11  ;;  %v408_v17 = vmul.f32 %v404_v13, %v366_v11 }
  0x8a   : > { %v379_v18 = vpop.permute.xlu0 %378 }
  0x8b   : > { %v381_v19 = vadd.f32 %v379_v18, %v374_v14  ;;  %v382_v20 = vadd.f32 %v379_v18, %v375_v15  ;;  %v409_v21 = vadd.f32 %v407_v16, %v379_v18  ;;  %v410_v22 = vadd.f32 %v408_v17, %v379_v18 }
  0x8d   : > { %v383_v23 = vmul.f32 1.442695, %v381_v19  ;;  %v385_v24 = vmul.f32 1.442695, %v382_v20  ;;  %v411_v25 = vmul.f32 1.442695, %v409_v21 }
  0x8e   : > { %v413_v26 = vmul.f32 1.442695, %v410_v22 }
  0x8f   : > { %655 = vpow2.f32 %v383_v23 }
  0x90   : > { %657 = vpow2.f32 %v385_v24 }
  0x91   : > { %659 = vpow2.f32 %v411_v25 }
  0x92   : > { %661 = vpow2.f32 %v413_v26 }
  0x95   : > { %v656_v27 = vpop.eup %655 }
  0x96   : > { %v658_v28 = vpop.eup %657  ;;  %v387_v30 = vmax.f32 %v656_v27, 0.0 }
  0x97   : > { %v660_v29 = vpop.eup %659  ;;  %v388_v31 = vmax.f32 %v658_v28, 0.0 }
  0x98   : > { %v662_v32 = vpop.eup %661  ;;  %v415_v34 = vmax.f32 %v660_v29, 0.0  ;;  %v389_v36 = vmin.f32 %v387_v30, 1.0 }
  0x99   : > { %v390_v33 = vmin.f32 %v388_v31, 1.0  ;;  %v416_v35 = vmax.f32 %v662_v32, 0.0 }
  0x9a   : > { %v417_v40 = vmin.f32 %v415_v34, 1.0 }
  0x9b   : > { %v393_v37 = vrot.slane %v390_v33, 4  ;;  %v418_v38 = vmin.f32 %v416_v35, 1.0 }
  0x9d   : > { %v395_v39 = vsel %vm394_vm0, %v389_v36, %v393_v37  ;;  %v421_v41 = vrot.slane %v418_v38, 4 }
  0x9e   : > { %397 = vst [vmem:[%s346_s13] sm:$0x77] %v395_v39 }
  0x9f   : > { %v422_v42 = vsel %vm394_vm0, %v417_v40, %v421_v41 }
  0xa0   : > { %424 = vst [vmem:[%s356_s16] sm:$0x77] %v422_v42 }
  0xa1 PF: > { %s16_s20 = sadd.s32 1, %s685_s20   ;;  %s775_s18 = smov %s681_s19 }
  0xa2   : > { %p13_p5 = scmp.ge.s32.totalorder %s16_s20, 4   ;;  %s776_s19 = smov %s778_s21 }
  0xa4   :  { %15 = sbr.rel (!%p13_p5) target bundleno = 2 (0x2), region = 87 }

</bundles_post_ra>
